<compile_context>
chip_gen: v7x
topology: tpu7x:2x2x1
jax: 0.10.0
libtpu: 0.0.40
codegen_flags: <defaults>
</compile_context>

<pallas_src>
import functools

import jax
import jax.numpy as jnp
from jax import lax
from jax.experimental import pallas as pl
from jax.experimental.pallas import tpu as pltpu


# --------------------------- hardware budgeting ----------------------------- #

def _vmem_budget_bytes():
    """Per-TensorCore VMEM budget with headroom for compiler scratch."""
    cap = None
    try:
        info = pltpu.get_tpu_info()
        cap = int(getattr(info, "vmem_capacity_bytes", 0)) or None
    except Exception:
        cap = None
    if cap is None:
        cap = 64 << 20                      # conservative: v7x per-TC VMEM
    # >=16 MiB headroom for pipelining / internal scratch; never ask >100 MiB.
    return max(min(cap - (16 << 20), 100 << 20), 16 << 20)


def _device_kind():
    try:
        return jax.devices()[0].device_kind.lower()
    except Exception:
        return ""


def _default_gate_tokens():
    # v5e: 4x 128x128 MXU -> TM=128 already saturates it and halves the f32
    # intermediates (less vreg spill / single-vst pressure). v6e/v7x: 256.
    return 128 if "v5" in _device_kind() else 256


def _choose_tm(n, target):
    # Full-extent block (always legal) for small token counts, otherwise a
    # fixed MXU/sublane-aligned tile; Pallas masks the partial last block.
    return n if n <= target else target


def _resident_spec(block_shape, index_map):
    # Constant index_map weights: single-buffered (default 2 would just
    # duplicate them in VMEM without ever re-fetching).
    try:
        return pl.BlockSpec(block_shape, index_map,
                            pipeline_mode=pl.Buffered(1))
    except Exception:  # older jax without pipeline_mode: fall back gracefully
        return pl.BlockSpec(block_shape, index_map)


# ----------------------------- kernels ------------------------------------ #

def _scalenorm_kernel(x_ref, g_ref, o_ref, *, eps):
    x = x_ref[...].astype(jnp.float32)
    ss = jnp.sum(x * x, axis=-1, keepdims=True)
    # g / clamp(||x||, eps)  ==  g * min(rsqrt(ss), 1/eps)   (single EUP op)
    scale = g_ref[0] * jnp.minimum(lax.rsqrt(ss), 1.0 / eps)
    o_ref[...] = (x * scale).astype(o_ref.dtype)


def _gate_kernel(x_ref, y_ref, wy_ref, wx_ref, ug_ref, bz_ref, o_ref, *, h):
    # Load x once; reuse for bf16 matmul input and f32 residual path.
    xf = x_ref[...].astype(jnp.float32)
    xb = xf.astype(jnp.bfloat16)
    yb = y_ref[...].astype(jnp.bfloat16)

    # Fused independent matmuls: y @ [Wr|Wz|Wg]^T  and  x @ [Ur|Uz]^T.
    yw = jnp.dot(yb, wy_ref[...], preferred_element_type=jnp.float32)  # [TM,3H]
    xw = jnp.dot(xb, wx_ref[...], preferred_element_type=jnp.float32)  # [TM,2H]

    r = jax.nn.sigmoid(yw[:, :h] + xw[:, :h])
    z = jax.nn.sigmoid(yw[:, h:2 * h] + bz_ref[...] + xw[:, h:2 * h])
    # (r*x) @ Ug^T has a data dependency on r -> stays a separate matmul.
    rg = jnp.dot((r * xf).astype(jnp.bfloat16), ug_ref[...],
                 preferred_element_type=jnp.float32)
    hh = jnp.tanh(yw[:, 2 * h:] + rg)

    # (1-z)*x + z*h == x + z*(h - x): one fewer wide VPU multiply.
    o_ref[...] = (xf + z * (hh - xf)).astype(o_ref.dtype)


def _gate_kernel_ktiled(xfull_ref, xk_ref, yk_ref, wy_ref, wx_ref, ug_ref,
                        bz_ref, o_ref, yw_acc, xw_acc, *, h):
    """K-tiled gate: accumulate yw/xw over the contraction axis, epilogue on
    the last K step. Used when the fused-resident weights don't fit VMEM."""
    k = pl.program_id(1)

    @pl.when(k == 0)
    def _():
        yw_acc[...] = jnp.zeros_like(yw_acc)
        xw_acc[...] = jnp.zeros_like(xw_acc)

    yw_acc[...] += jnp.dot(yk_ref[...].astype(jnp.bfloat16), wy_ref[...],
                           preferred_element_type=jnp.float32)
    xw_acc[...] += jnp.dot(xk_ref[...].astype(jnp.bfloat16), wx_ref[...],
                           preferred_element_type=jnp.float32)

    @pl.when(k == pl.num_programs(1) - 1)
    def _():
        xf = xfull_ref[...].astype(jnp.float32)
        yw = yw_acc[...]
        xw = xw_acc[...]
        r = jax.nn.sigmoid(yw[:, :h] + xw[:, :h])
        z = jax.nn.sigmoid(yw[:, h:2 * h] + bz_ref[...] + xw[:, h:2 * h])
        rg = jnp.dot((r * xf).astype(jnp.bfloat16), ug_ref[...],
                     preferred_element_type=jnp.float32)
        hh = jnp.tanh(yw[:, 2 * h:] + rg)
        o_ref[...] = (xf + z * (hh - xf)).astype(o_ref.dtype)


# ----------------------------- wrappers ------------------------------------ #

def scalenorm(x2d, g, eps=1e-6, *, block_tokens=512):
    n, h = x2d.shape
    budget = _vmem_budget_bytes()
    itemsize = jnp.dtype(x2d.dtype).itemsize

    def vmem(tm):
        # 2x-buffered in + out tiles + f32 intermediates + small headroom.
        return 2 * (2 * tm * h * itemsize) + 2 * tm * h * 4 + (2 << 20)

    tm = _choose_tm(n, block_tokens)
    while tm > 128 and vmem(tm) > budget:
        tm = max(128, tm // 2)
    vmem_limit = int(min(max(vmem(tm), 16 << 20), budget))

    return pl.pallas_call(
        functools.partial(_scalenorm_kernel, eps=eps),
        out_shape=jax.ShapeDtypeStruct((n, h), x2d.dtype),
        grid=(pl.cdiv(n, tm),),
        in_specs=[
            pl.BlockSpec((tm, h), lambda i: (i, 0)),                 # x tile
            pl.BlockSpec(memory_space=pltpu.MemorySpace.SMEM),       # g scalar
        ],
        out_specs=pl.BlockSpec((tm, h), lambda i: (i, 0)),
        compiler_params=pltpu.CompilerParams(
            dimension_semantics=("parallel",),
            vmem_limit_bytes=vmem_limit),
    )(x2d, g)


def gate(x2d, y2d, w_y, w_x, w_ug, bz, *, block_tokens=None, block_k=512,
         force_ktiled=False):
    n, h = x2d.shape
    if block_tokens is None:
        block_tokens = _default_gate_tokens()
    budget = _vmem_budget_bytes()
    itemsize = jnp.dtype(x2d.dtype).itemsize
    wbytes = jnp.dtype(w_y.dtype).itemsize

    tm0 = _choose_tm(n, block_tokens)

    # ---- Fused path (all six weights VMEM-resident, counted ONCE). ----
    def fused_vmem(tm):
        weights = (w_y.size + w_x.size + w_ug.size) * wbytes + bz.size * 4
        io = 2 * (2 * tm * h * itemsize) + 2 * tm * h * itemsize     # x,y,out
        interm = (3 * h + 2 * h + 5 * h) * tm * 4                    # yw,xw,r,z,hh,rg,xf
        return weights + io + interm + (4 << 20)

    tm = tm0
    while tm > 64 and fused_vmem(tm) > budget:
        tm = max(64, tm // 2)
    use_ktiled = force_ktiled or fused_vmem(tm) > budget

    if not use_ktiled:
        vmem_limit = int(min(max(fused_vmem(tm), 16 << 20), budget))
        return pl.pallas_call(
            functools.partial(_gate_kernel, h=h),
            out_shape=jax.ShapeDtypeStruct((n, h), x2d.dtype),
            grid=(pl.cdiv(n, tm),),
            in_specs=[
                pl.BlockSpec((tm, h), lambda i: (i, 0)),             # x tile
                pl.BlockSpec((tm, h), lambda i: (i, 0)),             # y tile
                _resident_spec((h, 3 * h), lambda i: (0, 0)),        # [Wr|Wz|Wg]^T
                _resident_spec((h, 2 * h), lambda i: (0, 0)),        # [Ur|Uz]^T
                _resident_spec((h, h), lambda i: (0, 0)),            # Ug^T
                _resident_spec((1, h), lambda i: (0, 0)),            # bz
            ],
            out_specs=pl.BlockSpec((tm, h), lambda i: (i, 0)),
            compiler_params=pltpu.CompilerParams(
                dimension_semantics=("parallel",),
                vmem_limit_bytes=vmem_limit),
        )(x2d, y2d, w_y, w_x, w_ug, bz)

    # ---- K-tiled path (large H / v7x): stream [TK,3H]+[TK,2H] bf16 weight
    # slabs, accumulate yw/xw in f32 VMEM scratch, epilogue on last K step. ----
    if h % 128 == 0:
        tk = max(128, (min(block_k, h) // 128) * 128)
        while h % tk != 0:
            tk -= 128
    else:
        tk = h   # degenerate single-step fallback for odd hidden sizes

    def ktiled_vmem(tm):
        stream_w = 2 * tk * 5 * h * wbytes            # double-buffered slabs
        resident = w_ug.size * wbytes + bz.size * 4   # Buffered(1)
        io = 3 * (2 * tm * h * itemsize)              # x_full, x_k+y_k, out
        acc = tm * 5 * h * 4                          # yw/xw f32 scratch
        interm = 6 * tm * h * 4
        return stream_w + resident + io + acc + interm + (4 << 20)

    tm = tm0
    while tm > 64 and ktiled_vmem(tm) > budget:
        tm = max(64, tm // 2)
    vmem_limit = int(min(max(ktiled_vmem(tm), 16 << 20), budget))

    return pl.pallas_call(
        functools.partial(_gate_kernel_ktiled, h=h),
        out_shape=jax.ShapeDtypeStruct((n, h), x2d.dtype),
        grid=(pl.cdiv(n, tm), h // tk),
        in_specs=[
            pl.BlockSpec((tm, h), lambda i, k: (i, 0)),              # x (full, epilogue)
            pl.BlockSpec((tm, tk), lambda i, k: (i, k)),             # x K-slab
            pl.BlockSpec((tm, tk), lambda i, k: (i, k)),             # y K-slab
            pl.BlockSpec((tk, 3 * h), lambda i, k: (k, 0)),          # W_y K-slab
            pl.BlockSpec((tk, 2 * h), lambda i, k: (k, 0)),          # W_x K-slab
            _resident_spec((h, h), lambda i, k: (0, 0)),             # Ug^T
            _resident_spec((1, h), lambda i, k: (0, 0)),             # bz
        ],
        out_specs=pl.BlockSpec((tm, h), lambda i, k: (i, 0)),
        scratch_shapes=[pltpu.VMEM((tm, 3 * h), jnp.float32),
                        pltpu.VMEM((tm, 2 * h), jnp.float32)],
        compiler_params=pltpu.CompilerParams(
            dimension_semantics=("parallel", "arbitrary"),
            vmem_limit_bytes=vmem_limit),
    )(x2d, x2d, y2d, w_y, w_x, w_ug, bz)


class SublayerConnection:
    """JAX/Pallas port of SublayerConnection (pre_norm | rezero)."""

    def __init__(self, hidden_size, norm_type="pre_norm", key=None,
                 gate_bias=-2.0, rezero_fill=0.0, eps=1e-6):
        assert norm_type in ("pre_norm", "rezero")
        self.norm_type = norm_type
        self.hidden_size = hidden_size
        self.eps = eps
        key = jax.random.PRNGKey(0) if key is None else key

        if norm_type == "pre_norm":
            # ScaleNorm: g = sqrt(hidden_size), kept as a (1,) SMEM scalar.
            self.g = jnp.sqrt(jnp.asarray([hidden_size], jnp.float32))
            # Gate: six HxH linears (nn.Linear computes v @ W.T).
            ks = jax.random.split(key, 6)
            s = float(hidden_size) ** -0.5
            names = ["Wr", "Ur", "Wz", "Uz", "Wg", "Ug"]
            W = {nme: jax.random.uniform(k, (hidden_size, hidden_size),
                                         jnp.float32, -s, s)
                 for nme, k in zip(names, ks)}
            # Pre-transpose + fuse + cast to bf16 ONCE (no per-call .T ops).
            self.w_y = jnp.concatenate(
                [W["Wr"].T, W["Wz"].T, W["Wg"].T], axis=1).astype(jnp.bfloat16)
            self.w_x = jnp.concatenate(
                [W["Ur"].T, W["Uz"].T], axis=1).astype(jnp.bfloat16)
            self.w_ug = W["Ug"].T.astype(jnp.bfloat16)
            self.bz = jnp.full((1, hidden_size), gate_bias, jnp.float32)
        else:
            self.rezero_w = jnp.asarray([rezero_fill], jnp.float32)

    def __call__(self, x, sublayer, **kwargs):
        b, s, h = x.shape
        x2d = x.reshape(b * s, h)
        if self.norm_type == "rezero":
            # Pure elementwise residual: plain jnp so XLA fuses it with the
            # sublayer epilogue (a separate pallas_call only adds HBM IO).
            y2d = sublayer(x2d, **kwargs)
            out = x2d + y2d * self.rezero_w[0]
        else:  # pre_norm
            xn = scalenorm(x2d, self.g, self.eps)
            y2d = sublayer(xn, **kwargs)        # external sublayer: plain JAX
            out = gate(x2d, y2d, self.w_y, self.w_x, self.w_ug, self.bz)
        return out.reshape(b, s, h)


# ------------------------------ reference ---------------------------------- #

def _ref_forward(module, x, sublayer):
    b, s, h = x.shape
    x2d = x.reshape(b * s, h).astype(jnp.float32)
    if module.norm_type == "rezero":
        y = sublayer(x2d)
        out = x2d + y * module.rezero_w[0]
    else:
        nrm = jnp.maximum(jnp.linalg.norm(x2d, axis=-1, keepdims=True),
                          module.eps)
        xn = x2d * (module.g[0] / nrm)
        y = sublayer(xn)
        # Mirror the kernel's bf16 MXU inputs / f32 accumulation.
        xb = x2d.astype(jnp.bfloat16).astype(jnp.float32)
        yb = y.astype(jnp.bfloat16).astype(jnp.float32)
        wy = module.w_y.astype(jnp.float32)
        wx = module.w_x.astype(jnp.float32)
        wug = module.w_ug.astype(jnp.float32)
        yw = yb @ wy
        xw = xb @ wx
        r = jax.nn.sigmoid(yw[:, :h] + xw[:, :h])
        z = jax.nn.sigmoid(yw[:, h:2 * h] + module.bz + xw[:, h:2 * h])
        rx = (r * x2d).astype(jnp.bfloat16).astype(jnp.float32)
        hh = jnp.tanh(yw[:, 2 * h:] + rx @ wug)
        out = (1.0 - z) * x2d + z * hh
    return out.reshape(b, s, h)


# -------------------------------- main ------------------------------------- #

if __name__ == "__main__":
    batch, seq, hidden = 2, 8, 32
    key = jax.random.PRNGKey(0)
    kx, kw, kb, kp, kx2, ky2 = jax.random.split(key, 6)

    x = jax.random.normal(kx, (batch, seq, hidden), jnp.float32)

    # Deterministic stand-in "sublayer" (a forward argument in PyTorch):
    # a simple linear, kept in plain JAX (glue).
    Ws = jax.random.normal(kw, (hidden, hidden), jnp.float32) * 0.05
    bs = jax.random.normal(kb, (hidden,), jnp.float32) * 0.05
    sublayer = lambda h2d: h2d @ Ws.T + bs

    # pre_norm path (ScaleNorm + fused Gate)
    mod_pre = SublayerConnection(hidden, norm_type="pre_norm", key=kp)
    out_pre = jax.block_until_ready(mod_pre(x, sublayer))
    ref_pre = _ref_forward(mod_pre, x, sublayer)
    assert jnp.allclose(out_pre, ref_pre, atol=2e-2, rtol=2e-2), (
        float(jnp.max(jnp.abs(out_pre - ref_pre))))

    # rezero path (x + w * sublayer(x))
    mod_rz = SublayerConnection(hidden, norm_type="rezero", rezero_fill=0.1)
    out_rz = jax.block_until_ready(mod_rz(x, sublayer))
    ref_rz = _ref_forward(mod_rz, x, sublayer)
    assert jnp.allclose(out_rz, ref_rz, atol=1e-4, rtol=1e-4)

    # K-tiled gate path (auto-selected for large H on v7x): force it at a
    # small 128-aligned hidden size and cross-check against the fused kernel.
    h2 = 256
    mod_kt = SublayerConnection(h2, norm_type="pre_norm", key=kp)
    x2 = jax.random.normal(kx2, (batch * seq, h2), jnp.float32)
    y2 = jax.random.normal(ky2, (batch * seq, h2), jnp.float32)
    g_fused = jax.block_until_ready(
        gate(x2, y2, mod_kt.w_y, mod_kt.w_x, mod_kt.w_ug, mod_kt.bz))
    g_kt = jax.block_until_ready(
        gate(x2, y2, mod_kt.w_y, mod_kt.w_x, mod_kt.w_ug, mod_kt.bz,
             force_ktiled=True, block_k=128))
    assert jnp.allclose(g_fused, g_kt, atol=5e-3, rtol=5e-3), (
        float(jnp.max(jnp.abs(g_fused - g_kt))))

    print("KERNEL_OK")
</pallas_src>

<mosaic_0001>
module attributes {stable_mosaic.version = 11 : i64} {
  func.func @_scalenorm_kernel(%arg0: i32, %arg1: memref<16x32xf32, #tpu.memory_space<vmem>>, %arg2: memref<1xf32, #tpu.memory_space<smem>>, %arg3: memref<16x32xf32, #tpu.memory_space<vmem>>) attributes {dimension_semantics = [#tpu.dimension_semantics<parallel>], iteration_bounds = array<i64: 1>, scalar_prefetch = 0 : i64, scratch_operands = 0 : i64, tpu.core_type = #tpu.core_type<tc>, window_params = [{transform_indices = @transform_0, window_bounds = array<i64: 16, 32>}, {transform_indices = @transform_1, window_bounds = array<i64: 1>}, {transform_indices = @transform_2, window_bounds = array<i64: 16, 32>}]} {
    %c0 = arith.constant 0 : index
    %c0_0 = arith.constant 0 : index
    %0 = vector.load %arg1[%c0, %c0_0] : memref<16x32xf32, #tpu.memory_space<vmem>>, vector<16x32xf32>
    %1 = arith.mulf %0, %0 : vector<16x32xf32>
    %cst = arith.constant dense<0.000000e+00> : vector<16xf32>
    %2 = vector.multi_reduction <add>, %1, %cst [1] : vector<16x32xf32> to vector<16xf32>
    %3 = vector.shape_cast %2 : vector<16xf32> to vector<16x1xf32>
    %c0_1 = arith.constant 0 : index
    %4 = memref.load %arg2[%c0_1] : memref<1xf32, #tpu.memory_space<smem>>
    %5 = math.rsqrt %3 : vector<16x1xf32>
    %cst_2 = arith.constant 1.000000e+06 : f32
    %6 = vector.broadcast %cst_2 : f32 to vector<16x1xf32>
    %7 = arith.minimumf %5, %6 : vector<16x1xf32>
    %8 = vector.broadcast %4 : f32 to vector<16x1xf32>
    %9 = arith.mulf %8, %7 : vector<16x1xf32>
    %10 = vector.broadcast %9 : vector<16x1xf32> to vector<16x32xf32>
    %11 = arith.mulf %0, %10 : vector<16x32xf32>
    %c0_3 = arith.constant 0 : index
    %c0_4 = arith.constant 0 : index
    %12 = vector.load %arg3[%c0_3, %c0_4] : memref<16x32xf32, #tpu.memory_space<vmem>>, vector<16x32xf32>
    tpu.vector_store %arg3[%c0_3, %c0_4], %11 {strides = array<i32>} : memref<16x32xf32, #tpu.memory_space<vmem>>, vector<16x32xf32>,
    return
  }
  func.func @transform_0(%arg0: i32) -> (i32, i32) {
    %c0_i32 = arith.constant 0 : i32
    %c0_i32_0 = arith.constant 0 : i32
    return %arg0, %c0_i32 : i32, i32
  }
  func.func @transform_1(%arg0: i32) -> i32 {
    %c0_i32 = arith.constant 0 : i32
    %c0_i32_0 = arith.constant 0 : i32
    return %c0_i32 : i32
  }
  func.func @transform_2(%arg0: i32) -> (i32, i32) {
    %c0_i32 = arith.constant 0 : i32
    %c0_i32_0 = arith.constant 0 : i32
    return %arg0, %c0_i32 : i32, i32
  }
}

</mosaic_0001>

<bundles_post_ra>
// kernel: tpu_custom_call.1
= control target key start
LH: loop header
LB: loop body
LE: loop exit
PB: predicated region body
PF: predicated region fallthrough
CT: control target
= control target key end

     0   :  { %8 = vsyncpa [#allocation4], 0  ;;  %s179_s0 = inlined_call_operand.hbm [shape: f32[16,32], index: 0, kind: input, shape index: {}]   ;;  %s180_s1 = inlined_call_operand.<no memory space> [shape: f32[1], index: 1, kind: input, shape index: {}]   ;;  %s181_s2 = inlined_call_operand.hbm [shape: f32[16,32], index: 2, kind: output, shape index: {}]  }
   0x1   :  { %9 = vsyncpa [#allocation5], 0  ;;  %s123_s9 = smov [#allocation3]   ;;  %s75_s13 = scalar_lea.hbm %s179_s0, 256 }
   0x2   :  { %s15_s10 = sshll.u32 %s123_s9, 4  ;;  %p76_p0 = scmp.ne.s32.totalorder %s179_s0, %s75_s13  ;;  %s16_s10 = int_to_ptr.vmem [resolvable:$true] %s15_s10 }
   0x3   :  { %p79_p1 = scmp.lt.u32.totalorder %s75_s13, %s179_s0 }
   0x5   :  { %p81_p2 = pnand %p79_p1, %p76_p0 }
   0x7   :  { %84 = shalt.err (!%p81_p2)
}
   0x8   :  { %s85_s18 = scalar_lea.vmem %s16_s10, 256  ;;  %p90_p4 = scmp.lt.s32.totalorder %s16_s10, %s16_s10 }
   0x9   :  { %p86_p3 = scmp.ne.s32.totalorder %s16_s10, %s85_s18  ;;  %p91_p5 = scmp.lt.s32.totalorder %s85_s18, %s85_s18 }
   0xb   :  { %p92_p6 = por %p91_p5, %p90_p4 }
   0xd   :  { %p93_p7 = pnand %p92_p6, %p86_p3 }
   0xf   :  { %96 = shalt.err (!%p93_p7)
}
  0x10   :  { %s124_s19 = smov 128   ;;  %s125_s20 = smov 8  }
  0x11   :  { %21 = dma.hbm_to_vmem [thread:$0]  %s179_s0, 256, %s16_s10, [#allocation4], %s124_s19, %s124_s19, %s125_s20  }
  0x12   :  { %119 = dma.done.wait [#allocation4], 256  }
  0x13   :  { %120 = vsyncadd [#allocation4], 4294967040  ;;  %v27_v0 = vld [vmem:[#allocation3] sm:$0xff]  ;;  %vm31_vm0 = vcmask 261120   ;;  %v28_v1 = vld [vmem:[#allocation3 + $0x8] sm:$0xff]  ;;  %v43_v9 = vstv %s180_s1  ;;  %s126_s24 = smov [#allocation6]  }
  0x14   :  { %v29_v2 = vmul.f32 %v27_v0, %v27_v0  ;;  %v30_v3 = vmul.f32 %v28_v1, %v28_v1  ;;  %s55_s25 = sshll.u32 %s126_s24, 4  ;;  %s56_s25 = int_to_ptr.vmem [resolvable:$true] %s55_s25 }
  0x15   :  { %s97_s26 = scalar_lea.vmem %s56_s25, 256  ;;  %p102_p9 = scmp.lt.s32.totalorder %s56_s25, %s56_s25 }
  0x16   :  { %v32_v4 = vsel %vm31_vm0, %v29_v2, 0.0  ;;  %v35_v5 = vsel %vm31_vm0, %v30_v3, 0.0  ;;  %p98_p8 = scmp.ne.s32.totalorder %s56_s25, %s97_s26  ;;  %p103_p10 = scmp.lt.s32.totalorder %s97_s26, %s97_s26 }
  0x17   :  { %33 = vadd.xlane.f32.xlu0 %v32_v4 }
  0x18   :  { %p104_p11 = por %p103_p10, %p102_p9 }
  0x1a   :  { %p105_p12 = pnand %p104_p11, %p98_p8 }
  0x1b   :  { %36 = vadd.xlane.f32.xlu0 %v35_v5 }
  0xa4   :  { %v34_v6 = vpop.xlane.xlu0 %33 }
  0xa5   :  { %71 = vrsqrt.f32 %v34_v6 }
  0xa8   :  { %v37_v7 = vpop.xlane.xlu0 %36 }
  0xa9   :  { %73 = vrsqrt.f32 %v37_v7 }
  0xaf   :  { %v72_v8 = vpop.eup %71 }
  0xb0   :  { %v41_v10 = vmin.f32 %v72_v8, 1000000.0 }
  0xb2   :  { %v44_v11 = vmul.f32 %v43_v9, %v41_v10 }
  0xb3   :  { %v74_v12 = vpop.eup %73 }
  0xb4   :  { %v46_v13 = vmul.f32 %v44_v11, %v27_v0  ;;  %v42_v14 = vmin.f32 %v74_v12, 1000000.0 }
  0xb6   :  { %48 = vst.msk [vmem:[#allocation6] sm:$0xff] %vm31_vm0, %v46_v13  ;;  %v45_v15 = vmul.f32 %v43_v9, %v42_v14 }
  0xb8   :  { %v47_v16 = vmul.f32 %v45_v15, %v28_v1 }
  0xba   :  { %49 = vst.msk [vmem:[#allocation6 + $0x8] sm:$0xff] %vm31_vm0, %v47_v16 }
  0xbb   :  { %108 = shalt.err (!%p105_p12)
}
  0xbc   :  { %s109_s28 = scalar_lea.hbm %s181_s2, 256 }
  0xbd   :  { %p110_p13 = scmp.ne.s32.totalorder %s181_s2, %s109_s28  ;;  %p113_p0 = scmp.lt.u32.totalorder %s109_s28, %s181_s2 }
  0xbf   :  { %p115_p1 = pnand %p113_p0, %p110_p13 }
  0xc1   :  { %118 = shalt.err (!%p115_p1)
}
  0xc2   :  { %61 = dma.vmem_to_hbm [thread:$0]  %s56_s25, 256, %s181_s2, [#allocation5], %s124_s19, %s124_s19, %s125_s20  }
  0xc3   :  { %121 = dma.done.wait [#allocation5], 256  }
  0xc4   :  { %122 = vsyncadd [#allocation5], 4294967040 }
  0xc5   :  { %65 = vsyncpa [#allocation4], 1 }
  0xc6   :  { %66 = vsyncpa [#allocation5], 1 }

</bundles_post_ra>
